<compile_context>
chip_gen: v6e
topology: v6e:2x2x1
jax: 0.10.0
libtpu: 0.0.40
codegen_flags: <defaults>
</compile_context>

<pallas_src>
import functools

import jax
import jax.numpy as jnp
from jax.experimental import pallas as pl
from jax.experimental.pallas import tpu as pltpu

EPSILON = 1e-4
MAX_TILE_HW = 16 * 1024          # lane cap per block (per review: ~16K lanes)


# --------------------------------------------------------------------------- #
# Kernel body
# --------------------------------------------------------------------------- #
def _bifpn_concat_kernel(scale_ref, *refs, num_inputs):
    """scale_ref: SMEM (num_inputs,) pre-normalized fusion weights (f32).
    refs[:num_inputs]: VMEM (TILE_B, C, TILE_HW) input tiles.
    refs[num_inputs]:  VMEM (TILE_B, num_inputs*C, TILE_HW) concat output tile."""
    x_refs = refs[:num_inputs]
    out_ref = refs[num_inputs]
    c = x_refs[0].shape[1]
    for i in range(num_inputs):
        x = x_refs[i][...].astype(jnp.float32)
        out_ref[:, i * c:(i + 1) * c, :] = (scale_ref[i] * x).astype(out_ref.dtype)


# --------------------------------------------------------------------------- #
# Tile sizing (generation-aware, sublane-padding aware)
# --------------------------------------------------------------------------- #
def _round_up(x, m):
    return ((x + m - 1) // m) * m


def _sublane_pack(dtype):
    # rows per VMEM tile: 8 for f32, 16 for bf16, 32 for int8/fp8
    return max(8, 32 // jnp.dtype(dtype).itemsize)


def _vmem_budget_and_limit():
    """Derive (live-byte budget, requested vmem_limit, capacity) from hardware."""
    cap = None
    try:
        cap = int(pltpu.get_tpu_info().vmem_capacity_bytes)
    except Exception:
        cap = None
    if not cap or cap <= 0:
        cap = 64 * 1024 * 1024                      # conservative (v7x per-core)
    budget = min(cap // 2, 64 * 1024 * 1024)        # double-buffered live bytes
    limit = min(cap * 3 // 4, 96 * 1024 * 1024)     # scoped vmem limit request
    return budget, limit, cap


def _per_lane_bytes(c, num_inputs, in_dtype, out_dtype):
    """Bytes per lane column of one (single-buffered) grid block, incl. padding."""
    isz_in = jnp.dtype(in_dtype).itemsize
    isz_out = jnp.dtype(out_dtype).itemsize
    rows_in = _round_up(c, _sublane_pack(in_dtype))
    rows_out = _round_up(num_inputs * c, _sublane_pack(out_dtype))
    return num_inputs * rows_in * isz_in + rows_out * isz_out


def _pick_tiles(b, hw, c, num_inputs, in_dtype, out_dtype, budget):
    per_lane = _per_lane_bytes(c, num_inputs, in_dtype, out_dtype)
    # Largest lane tile (multiple of 128) under the double-buffered budget.
    max_lanes = budget // (2 * per_lane)
    max_lanes = max(128, (max_lanes // 128) * 128)
    max_lanes = min(max_lanes, MAX_TILE_HW)

    hw_padded = _round_up(hw, 128)
    if hw_padded <= max_lanes:
        # Whole spatial plane fits: take the full-dim block (always layout-legal)
        # and pack multiple batch rows per block to keep DMAs long.
        tile_hw = hw
        max_b = max(1, budget // (2 * hw_padded * per_lane))
        tile_b = 1
        for d in range(min(b, max_b), 0, -1):
            if b % d == 0:          # even divisor -> no ragged batch tail
                tile_b = d
                break
    else:
        tile_b = 1
        # Prefer a multiple-of-128 tile that divides hw evenly (no ragged tail).
        tile_hw = 0
        for t in range(max_lanes, 127, -128):
            if hw % t == 0:
                tile_hw = t
                break
        if tile_hw == 0:
            tile_hw = max_lanes     # ragged tail accepted (still correct)

    live = 2 * tile_b * _round_up(tile_hw, 128) * per_lane
    return tile_b, tile_hw, live


# --------------------------------------------------------------------------- #
# Wrapper
# --------------------------------------------------------------------------- #
def _normalized_scales(w, use_relu):
    w = w.astype(jnp.float32)
    if use_relu:
        w = jnp.maximum(w, 0.0)
    return w / (jnp.sum(w) + jnp.float32(EPSILON))


def bifpn_concat(xs, w, *, use_relu=True, max_live_bytes=None):
    """xs: list of (B, C, H, W) arrays (identical shape/dtype).
    w: (num_inputs,) float32 fusion weights.
    Returns (B, num_inputs*C, H, W): concat of weighted features along dim 1.
    Output dtype matches PyTorch promotion (promote(input dtype, weight dtype))."""
    num_inputs = len(xs)
    b, c, h, wdt = xs[0].shape
    hw = h * wdt
    in_dtype = xs[0].dtype

    scales = _normalized_scales(w, use_relu)
    out_dtype = jnp.promote_types(in_dtype, scales.dtype)
    xs_flat = [x.reshape(b, c, hw) for x in xs]

    budget, vmem_limit, cap = _vmem_budget_and_limit()
    if max_live_bytes is not None:            # testing hook: force smaller tiles
        budget = min(budget, int(max_live_bytes))
    tile_b, tile_hw, live = _pick_tiles(
        b, hw, c, num_inputs, in_dtype, out_dtype, budget)
    vmem_limit = int(min(max(vmem_limit, live + (4 << 20)), cap - (4 << 20)))

    grid = (pl.cdiv(b, tile_b), pl.cdiv(hw, tile_hw))
    kernel = functools.partial(_bifpn_concat_kernel, num_inputs=num_inputs)

    in_specs = [pl.BlockSpec(memory_space=pltpu.MemorySpace.SMEM)] + [
        pl.BlockSpec((tile_b, c, tile_hw), lambda bi, ti: (bi, 0, ti))
        for _ in range(num_inputs)
    ]
    out_spec = pl.BlockSpec((tile_b, num_inputs * c, tile_hw),
                            lambda bi, ti: (bi, 0, ti))

    out = pl.pallas_call(
        kernel,
        out_shape=jax.ShapeDtypeStruct((b, num_inputs * c, hw), out_dtype),
        grid=grid,
        in_specs=in_specs,
        out_specs=out_spec,
        compiler_params=pltpu.CompilerParams(
            dimension_semantics=("parallel", "parallel"),
            vmem_limit_bytes=vmem_limit,
        ),
    )(scales, *xs_flat)

    return out.reshape(b, num_inputs * c, h, wdt)


def bifpn_concat_ref(xs, w, *, use_relu=True):
    """Pure-JAX reference mirroring the PyTorch forward."""
    if use_relu:
        w = jnp.maximum(w, 0.0)
    weight = w / (jnp.sum(w) + EPSILON)
    weighted = [weight[i] * xs[i] for i in range(len(xs))]
    return jnp.concatenate(weighted, axis=1)


# --------------------------------------------------------------------------- #
# Self-test
# --------------------------------------------------------------------------- #
if __name__ == "__main__":
    key = jax.random.PRNGKey(0)

    def _check(xs, w_param, **kwargs):
        out = jax.block_until_ready(bifpn_concat(xs, w_param, **kwargs))
        ref = bifpn_concat_ref(xs, w_param,
                               use_relu=kwargs.get("use_relu", True))
        b_, c_, h_, w_ = xs[0].shape
        assert out.shape == (b_, len(xs) * c_, h_, w_), out.shape
        assert out.dtype == ref.dtype, (out.dtype, ref.dtype)
        err = float(jnp.max(jnp.abs(out.astype(jnp.float32)
                                    - ref.astype(jnp.float32))))
        assert err <= 1e-5, err

    # Case 1: small module-spec shapes (B=2, C=4, 16x16, 2 inputs, f32).
    k0, k1 = jax.random.split(key)
    x0 = jax.random.normal(k0, (2, 4, 16, 16), dtype=jnp.float32)
    x1 = jax.random.normal(k1, (2, 4, 16, 16), dtype=jnp.float32)
    _check([x0, x1], jnp.ones((2,), jnp.float32), use_relu=True)

    # Case 2: 3 inputs, bf16 activations, non-multiple-of-128 spatial (20x20),
    # exercises batch tiling of a full-dim spatial block and dtype promotion.
    k2, k3, k4 = jax.random.split(key, 3)
    ys = [jax.random.normal(k, (3, 8, 20, 20), dtype=jnp.bfloat16)
          for k in (k2, k3, k4)]
    _check(ys, jnp.asarray([0.5, 1.0, 2.0], jnp.float32), use_relu=True)

    # Case 3: force the spatial-tiling branch (grid > 1 along both axes) via a
    # tiny live-byte budget, to exercise the even-divisor tile selection.
    k5, k6 = jax.random.split(key)
    z0 = jax.random.normal(k5, (2, 8, 32, 32), dtype=jnp.float32)
    z1 = jax.random.normal(k6, (2, 8, 32, 32), dtype=jnp.float32)
    _check([z0, z1], jnp.ones((2,), jnp.float32), use_relu=True,
           max_live_bytes=128 * 1024)

    print("KERNEL_OK")
</pallas_src>

<mosaic_0001>
module attributes {stable_mosaic.version = 11 : i64} {
  func.func @_bifpn_concat_kernel(%arg0: i32, %arg1: i32, %arg2: memref<2xf32, #tpu.memory_space<smem>>, %arg3: memref<2x4x256xf32, #tpu.memory_space<vmem>>, %arg4: memref<2x4x256xf32, #tpu.memory_space<vmem>>, %arg5: memref<2x8x256xf32, #tpu.memory_space<vmem>>) attributes {dimension_semantics = [#tpu.dimension_semantics<parallel>, #tpu.dimension_semantics<parallel>], iteration_bounds = array<i64: 1, 1>, scalar_prefetch = 0 : i64, scratch_operands = 0 : i64, tpu.core_type = #tpu.core_type<tc>, window_params = [{transform_indices = @transform_0, window_bounds = array<i64: 2>}, {transform_indices = @transform_1, window_bounds = array<i64: 2, 4, 256>}, {transform_indices = @transform_2, window_bounds = array<i64: 2, 4, 256>}, {transform_indices = @transform_3, window_bounds = array<i64: 2, 8, 256>}]} {
    %c0 = arith.constant 0 : index
    %c0_0 = arith.constant 0 : index
    %c0_1 = arith.constant 0 : index
    %0 = vector.load %arg3[%c0, %c0_0, %c0_1] : memref<2x4x256xf32, #tpu.memory_space<vmem>>, vector<2x4x256xf32>
    %c0_2 = arith.constant 0 : index
    %1 = memref.load %arg2[%c0_2] : memref<2xf32, #tpu.memory_space<smem>>
    %2 = vector.broadcast %1 : f32 to vector<2x4x256xf32>
    %3 = arith.mulf %2, %0 : vector<2x4x256xf32>
    %c0_3 = arith.constant 0 : index
    %c0_4 = arith.constant 0 : index
    %c0_5 = arith.constant 0 : index
    %4 = vector.load %arg5[%c0_3, %c0_4, %c0_5] : memref<2x8x256xf32, #tpu.memory_space<vmem>>, vector<2x4x256xf32>
    tpu.vector_store %arg5[%c0_3, %c0_4, %c0_5], %3 {strides = array<i32>} : memref<2x8x256xf32, #tpu.memory_space<vmem>>, vector<2x4x256xf32>,
    %c0_6 = arith.constant 0 : index
    %c0_7 = arith.constant 0 : index
    %c0_8 = arith.constant 0 : index
    %5 = vector.load %arg4[%c0_6, %c0_7, %c0_8] : memref<2x4x256xf32, #tpu.memory_space<vmem>>, vector<2x4x256xf32>
    %c1 = arith.constant 1 : index
    %6 = memref.load %arg2[%c1] : memref<2xf32, #tpu.memory_space<smem>>
    %7 = vector.broadcast %6 : f32 to vector<2x4x256xf32>
    %8 = arith.mulf %7, %5 : vector<2x4x256xf32>
    %c0_9 = arith.constant 0 : index
    %c4 = arith.constant 4 : index
    %c0_10 = arith.constant 0 : index
    %9 = vector.load %arg5[%c0_9, %c4, %c0_10] : memref<2x8x256xf32, #tpu.memory_space<vmem>>, vector<2x4x256xf32>
    tpu.vector_store %arg5[%c0_9, %c4, %c0_10], %8 {strides = array<i32>} : memref<2x8x256xf32, #tpu.memory_space<vmem>>, vector<2x4x256xf32>,
    return
  }
  func.func @transform_0(%arg0: i32, %arg1: i32) -> i32 {
    %c0_i32 = arith.constant 0 : i32
    %c0_i32_0 = arith.constant 0 : i32
    return %c0_i32 : i32
  }
  func.func @transform_1(%arg0: i32, %arg1: i32) -> (i32, i32, i32) {
    %c0_i32 = arith.constant 0 : i32
    %c0_i32_0 = arith.constant 0 : i32
    return %arg0, %c0_i32, %arg1 : i32, i32, i32
  }
  func.func @transform_2(%arg0: i32, %arg1: i32) -> (i32, i32, i32) {
    %c0_i32 = arith.constant 0 : i32
    %c0_i32_0 = arith.constant 0 : i32
    return %arg0, %c0_i32, %arg1 : i32, i32, i32
  }
  func.func @transform_3(%arg0: i32, %arg1: i32) -> (i32, i32, i32) {
    %c0_i32 = arith.constant 0 : i32
    %c0_i32_0 = arith.constant 0 : i32
    return %arg0, %c0_i32, %arg1 : i32, i32, i32
  }
}

</mosaic_0001>

<bundles_post_ra>
// kernel: tpu_custom_call.1
= control target key start
LH: loop header
LB: loop body
LE: loop exit
PB: predicated region body
PF: predicated region fallthrough
CT: control target
= control target key end

     0   :  { %8 = vsyncpa [#allocation5], 0  ;;  %s230_s0 = inlined_call_operand.hbm [shape: f32[2], index: 0, kind: input, shape index: {}]   ;;  %s231_s1 = inlined_call_operand.hbm [shape: f32[2,4,256], index: 1, kind: input, shape index: {}]   ;;  %s232_s2 = inlined_call_operand.hbm [shape: f32[2,4,256], index: 2, kind: input, shape index: {}]   ;;  %s233_s3 = inlined_call_operand.hbm [shape: f32[2,8,256], index: 3, kind: output, shape index: {}]  }
   0x1   :  { %9 = vsyncpa [#allocation3], 0 }
   0x2   :  { %10 = vsyncpa [#allocation8], 0 }
   0x3   :  { %11 = vsyncpa [#allocation4], 0  ;;  %s190_s12 = smov [#allocation2]   ;;  %s191_s15 = smov [#allocation6]  }
   0x4   :  { %19 = dma.hbm_to_smem %s230_s0, 16, %s190_s12, [#allocation5]  }
   0x5   :  { %s25_s16 = sshll.u32 %s191_s15, 4  ;;  %s26_s16 = int_to_ptr.vmem [resolvable:$true] %s25_s16 }
   0x6   :  { %s130_s17 = scalar_lea.vmem %s26_s16, 256  ;;  %p135_p1 = scmp.lt.s32.totalorder %s26_s16, %s26_s16 }
   0x7   :  { %p131_p0 = scmp.ne.s32.totalorder %s26_s16, %s130_s17  ;;  %p136_p2 = scmp.lt.s32.totalorder %s130_s17, %s130_s17 }
   0x9   :  { %p137_p3 = por %p136_p2, %p135_p1 }
   0xb   :  { %p138_p4 = pnand %p137_p3, %p131_p0 }
   0xd   :  { %141 = shalt.err (!%p138_p4)
}
   0xe   :  { %s192_s18 = smov 128   ;;  %s193_s19 = smov 8  }
   0xf   :  { %31 = dma.hbm_to_vmem [thread:$0]  %s231_s1, 256, %s26_s16, [#allocation3], %s192_s18, %s192_s18, %s193_s19  }
  0x10   :  { %s194_s22 = smov [#allocation7]  }
  0x11   :  { %s37_s23 = sshll.u32 %s194_s22, 4  ;;  %s38_s23 = int_to_ptr.vmem [resolvable:$true] %s37_s23 }
  0x12   :  { %s150_s0 = scalar_lea.vmem %s38_s23, 256  ;;  %p155_p6 = scmp.lt.s32.totalorder %s38_s23, %s38_s23 }
  0x13   :  { %p151_p5 = scmp.ne.s32.totalorder %s38_s23, %s150_s0  ;;  %p156_p7 = scmp.lt.s32.totalorder %s150_s0, %s150_s0 }
  0x15   :  { %p157_p8 = por %p156_p7, %p155_p6 }
  0x17   :  { %p158_p9 = pnand %p157_p8, %p151_p5 }
  0x19   :  { %161 = shalt.err (!%p158_p9)
}
  0x1a   :  { %43 = dma.hbm_to_vmem [thread:$0]  %s232_s2, 256, %s38_s23, [#allocation8], %s192_s18, %s192_s18, %s193_s19  }
  0x1b   :  { %182 = dma.done.wait [#allocation5], 16  }
  0x1c   :  { %183 = vsyncadd [#allocation5], 4294967280 }
  0x1d   :  { %184 = dma.done.wait [#allocation3], 256  }
  0x1e   :  { %185 = vsyncadd [#allocation3], 4294967040 }
  0x1f   :  { %186 = dma.done.wait [#allocation8], 256  }
  0x20   :  { %187 = vsyncadd [#allocation8], 4294967040 }
  0x21   :  { %53 = sfence }
  0x22   :  { %s56_s1 = sld [smem:[#allocation2]]  ;;  %v54_v0 = vld [vmem:[#allocation6] sm:$0xff]  ;;  %v55_v1 = vld [vmem:[#allocation6 + $0x8] sm:$0xff]  ;;  %v70_v2 = vld [vmem:[#allocation7] sm:$0xff]  ;;  %s195_s27 = smov [#allocation9]  }
  0x23   :  { %s105_s26 = sld [smem:[#allocation2 + $0x1]]  ;;  %v71_v3 = vld [vmem:[#allocation7 + $0x8] sm:$0xff]  ;;  %s91_s28 = sshll.u32 %s195_s27, 4  ;;  %s92_s28 = int_to_ptr.vmem [resolvable:$true] %s91_s28 }
  0x24   :  { %s162_s2 = scalar_lea.vmem %s92_s28, 512  ;;  %p167_p11 = scmp.lt.s32.totalorder %s92_s28, %s92_s28 }
  0x25   :  { %p163_p10 = scmp.ne.s32.totalorder %s92_s28, %s162_s2  ;;  %p168_p12 = scmp.lt.s32.totalorder %s162_s2, %s162_s2 }
  0x27   :  { %p169_p13 = por %p168_p12, %p167_p11 }
  0x28   :  { %v57_v4 = vstv %s56_s1 }
  0x29   :  { %v58_v5 = vmul.f32 %v57_v4, %v54_v0  ;;  %v59_v6 = vmul.f32 %v57_v4, %v55_v1  ;;  %v73_v7 = vstv %s105_s26  ;;  %p170_p0 = pnand %p169_p13, %p163_p10 }
  0x2a   :  { %v74_v8 = vmul.f32 %v73_v7, %v70_v2  ;;  %v75_v9 = vmul.f32 %v73_v7, %v71_v3 }
  0x2b   :  { %66 = vst [vmem:[#allocation9] sm:$0xf] %v58_v5  ;;  %v62_v10 = vcombine.high %v58_v5, %v58_v5  ;;  %68 = vst [vmem:[#allocation9 + $0x10] sm:$0xf] %v59_v6  ;;  %v63_v11 = vcombine.high %v59_v6, %v59_v6 }
  0x2c   :  { %v78_v12 = vcombine.low %v74_v8, %v74_v8  ;;  %83 = vst [vmem:[#allocation9 + $0x8] sm:$0xf0] %v74_v8  ;;  %v79_v13 = vcombine.low %v75_v9, %v75_v9  ;;  %85 = vst [vmem:[#allocation9 + $0x18] sm:$0xf0] %v75_v9 }
  0x2d   :  { %67 = vst [vmem:[#allocation9 + $0x8] sm:$0xf] %v62_v10  ;;  %69 = vst [vmem:[#allocation9 + $0x18] sm:$0xf] %v63_v11 }
  0x2e   :  { %82 = vst [vmem:[#allocation9] sm:$0xf0] %v78_v12  ;;  %84 = vst [vmem:[#allocation9 + $0x10] sm:$0xf0] %v79_v13 }
  0x2f   :  { %173 = shalt.err (!%p170_p0)
}
  0x30   :  { %s196_s29 = smov 256   ;;  %s197_s30 = smov 16  }
  0x31   :  { %97 = dma.vmem_to_hbm [thread:$0]  %s92_s28, 512, %s233_s3, [#allocation4], %s196_s29, %s196_s29, %s197_s30  }
  0x32   :  { %188 = dma.done.wait [#allocation4], 512  }
  0x33   :  { %189 = vsyncadd [#allocation4], 4294966784 }
  0x34   :  { %101 = vsyncpa [#allocation3], 1 }
  0x35   :  { %102 = vsyncpa [#allocation8], 1 }
  0x36   :  { %103 = vsyncpa [#allocation4], 1 }
  0x37   :  { %104 = vsyncpa [#allocation5], 1 }

</bundles_post_ra>
